<compile_context>
chip_gen: v6e
topology: v6e:2x2x1
jax: 0.10.0
libtpu: 0.0.40
codegen_flags: <defaults>
</compile_context>

<pallas_src>
import functools

import jax
import jax.numpy as jnp
from jax.experimental import pallas as pl
from jax.experimental.pallas import tpu as pltpu

_LANE = 128


def _round_up(n, m):
    return (n + m - 1) // m * m


def _age_fma_kernel(params_ref, x_ref, o_ref):
    """params_ref: SMEM f32[4] = (w0, w1, w2, b); x_ref: VMEM [3, TB]; o_ref: VMEM [1, TB]."""
    w0 = params_ref[0]
    w1 = params_ref[1]
    w2 = params_ref[2]
    b = params_ref[3]
    x = x_ref[...].astype(jnp.float32)               # [3, TB]; upcast if caller fed bf16
    # Three VPU FMAs + scalar-broadcast bias add; no MXU involvement.
    y = x[0:1, :] * w0 + x[1:2, :] * w1 + x[2:3, :] * w2 + b   # [1, TB]
    o_ref[...] = y.astype(o_ref.dtype)


def age_calculator_forward(x, w, b, *, tb=131072, small_batch_threshold=1024):
    """Forward of nn.Linear(3, 1): x [B, 3], w [1, 3], b [1] -> [B, 1] f32."""
    B, F = x.shape
    assert F == 3

    w_f32 = w.astype(jnp.float32)
    b_f32 = b.astype(jnp.float32)

    # Small-B fast path: pallas dispatch + relayout cost several microseconds
    # while the actual work is nanoseconds; a single fused XLA op wins.
    if B < small_batch_threshold:
        return (x.astype(jnp.float32) @ w_f32.T + b_f32).astype(jnp.float32)

    # Batch tile (lanes per grid step): multiple of 128, capped at ceil(B/2)
    # so the "parallel" axis has >= 2 steps (v7x dual-TC sharding) when B > 128.
    tb = max(_LANE, min(tb, _round_up(pl.cdiv(B, 2), _LANE)))

    # Lane-dense kernel layout: features on sublanes, batch on lanes.  Pad only
    # to the next 128-lane multiple (Pallas masks the ragged last block against
    # tb), and let the relayout fuse into the pallas_call input.
    Bp = _round_up(B, _LANE)
    x_t = jnp.pad(x.T, ((0, 0), (0, Bp - B)))        # [3, Bp]

    # Tiny SMEM-resident scalar table: (w0, w1, w2, b).
    params = jnp.concatenate([w_f32.reshape(-1), b_f32.reshape(-1)])  # [4] f32

    out_pad = pl.pallas_call(
        _age_fma_kernel,
        out_shape=jax.ShapeDtypeStruct((1, Bp), jnp.float32),
        grid=(pl.cdiv(Bp, tb),),
        in_specs=[
            # Parameters: scalar path, whole array resident in SMEM.
            pl.BlockSpec(memory_space=pltpu.MemorySpace.SMEM),
            # Activations: (3, tb) tile; first dim == full extent, last dim multiple of 128.
            pl.BlockSpec((3, tb), lambda i: (0, i)),
        ],
        # Lane-dense output tile (1, tb): unmasked full-lane stores.
        out_specs=pl.BlockSpec((1, tb), lambda i: (0, i)),
        compiler_params=pltpu.CompilerParams(
            dimension_semantics=("parallel",),
            vmem_limit_bytes=48 * 1024 * 1024,
            # Let the transpose/pad producer of x_t fuse into the kernel input
            # instead of materializing an extra HBM copy of x.
            allow_input_fusion=[False, True],
        ),
        cost_estimate=pl.CostEstimate(
            flops=6 * B,
            transcendentals=0,
            bytes_accessed=x.size * x.dtype.itemsize + 4 * B,
        ),
    )(params, x_t)

    # Back to the PyTorch output layout [B, 1] (drops padded lanes).
    return out_pad[0, :B].reshape(B, 1)


if __name__ == "__main__":
    key = jax.random.PRNGKey(0)
    kx, kw, kb = jax.random.split(key, 3)

    B = 8
    # Example input: [B, 3] features feeding the "age" regressor.
    x = jax.random.normal(kx, (B, 3), dtype=jnp.float32)

    # Deterministic parameter init matching nn.Linear(3, 1) shapes: weight [1, 3], bias [1].
    bound = 1.0 / jnp.sqrt(3.0)
    w = jax.random.uniform(kw, (1, 3), minval=-bound, maxval=bound, dtype=jnp.float32)
    b = jax.random.uniform(kb, (1,), minval=-bound, maxval=bound, dtype=jnp.float32)

    # Pure-JAX reference of the forward semantics (x @ W.T + b).
    ref = x @ w.T + b

    # 1) Force the Pallas path (the default small-batch fast path would skip it at B=8).
    fwd_pallas = jax.jit(functools.partial(age_calculator_forward, small_batch_threshold=0))
    out_pallas = fwd_pallas(x, w, b)
    jax.block_until_ready(out_pallas)
    assert out_pallas.shape == (B, 1)
    assert jnp.allclose(out_pallas, ref, atol=1e-5, rtol=1e-5)

    # 2) Default path: small-batch fast path (no pallas dispatch for B=8).
    fwd_auto = jax.jit(age_calculator_forward)
    out_fast = fwd_auto(x, w, b)
    jax.block_until_ready(out_fast)
    assert out_fast.shape == (B, 1)
    assert jnp.allclose(out_fast, ref, atol=1e-5, rtol=1e-5)

    print("KERNEL_OK")
</pallas_src>

<mosaic_0001>
module attributes {stable_mosaic.version = 11 : i64} {
  func.func @_age_fma_kernel(%arg0: i32, %arg1: memref<4xf32, #tpu.memory_space<smem>>, %arg2: memref<3x128xf32, #tpu.memory_space<vmem>>, %arg3: memref<1x128xf32, #tpu.memory_space<vmem>>) attributes {dimension_semantics = [#tpu.dimension_semantics<parallel>], iteration_bounds = array<i64: 1>, scalar_prefetch = 0 : i64, scratch_operands = 0 : i64, tpu.core_type = #tpu.core_type<tc>, window_params = [{transform_indices = @transform_0, window_bounds = array<i64: 4>}, {transform_indices = @transform_1, window_bounds = array<i64: 3, 128>}, {transform_indices = @transform_2, window_bounds = array<i64: 1, 128>}]} {
    %c0 = arith.constant 0 : index
    %0 = memref.load %arg1[%c0] : memref<4xf32, #tpu.memory_space<smem>>
    %c1 = arith.constant 1 : index
    %1 = memref.load %arg1[%c1] : memref<4xf32, #tpu.memory_space<smem>>
    %c2 = arith.constant 2 : index
    %2 = memref.load %arg1[%c2] : memref<4xf32, #tpu.memory_space<smem>>
    %c3 = arith.constant 3 : index
    %3 = memref.load %arg1[%c3] : memref<4xf32, #tpu.memory_space<smem>>
    %c0_0 = arith.constant 0 : index
    %c0_1 = arith.constant 0 : index
    %4 = vector.load %arg2[%c0_0, %c0_1] : memref<3x128xf32, #tpu.memory_space<vmem>>, vector<3x128xf32>
    %5 = vector.extract_strided_slice %4 {offsets = [0, 0], sizes = [1, 128], strides = [1, 1]} : vector<3x128xf32> to vector<1x128xf32>
    %6 = vector.broadcast %0 : f32 to vector<1x128xf32>
    %7 = arith.mulf %5, %6 : vector<1x128xf32>
    %8 = vector.extract_strided_slice %4 {offsets = [1, 0], sizes = [1, 128], strides = [1, 1]} : vector<3x128xf32> to vector<1x128xf32>
    %9 = vector.broadcast %1 : f32 to vector<1x128xf32>
    %10 = arith.mulf %8, %9 : vector<1x128xf32>
    %11 = arith.addf %7, %10 : vector<1x128xf32>
    %12 = vector.extract_strided_slice %4 {offsets = [2, 0], sizes = [1, 128], strides = [1, 1]} : vector<3x128xf32> to vector<1x128xf32>
    %13 = vector.broadcast %2 : f32 to vector<1x128xf32>
    %14 = arith.mulf %12, %13 : vector<1x128xf32>
    %15 = arith.addf %11, %14 : vector<1x128xf32>
    %16 = vector.broadcast %3 : f32 to vector<1x128xf32>
    %17 = arith.addf %15, %16 : vector<1x128xf32>
    %c0_2 = arith.constant 0 : index
    %c0_3 = arith.constant 0 : index
    %18 = vector.load %arg3[%c0_2, %c0_3] : memref<1x128xf32, #tpu.memory_space<vmem>>, vector<1x128xf32>
    tpu.vector_store %arg3[%c0_2, %c0_3], %17 {strides = array<i32>} : memref<1x128xf32, #tpu.memory_space<vmem>>, vector<1x128xf32>,
    return
  }
  func.func @transform_0(%arg0: i32) -> i32 {
    %c0_i32 = arith.constant 0 : i32
    %c0_i32_0 = arith.constant 0 : i32
    return %c0_i32 : i32
  }
  func.func @transform_1(%arg0: i32) -> (i32, i32) {
    %c0_i32 = arith.constant 0 : i32
    %c0_i32_0 = arith.constant 0 : i32
    return %c0_i32, %arg0 : i32, i32
  }
  func.func @transform_2(%arg0: i32) -> (i32, i32) {
    %c0_i32 = arith.constant 0 : i32
    %c0_i32_0 = arith.constant 0 : i32
    return %c0_i32, %arg0 : i32, i32
  }
}

</mosaic_0001>

<bundles_post_ra>
// kernel: age_calculator_forward.2
= control target key start
LH: loop header
LB: loop body
LE: loop exit
PB: predicated region body
PF: predicated region fallthrough
CT: control target
= control target key end

     0   :  { %s118_s0 = inlined_call_operand.vmem [shape: f32[4], index: 0, kind: input, shape index: {}]   ;;  %s119_s1 = inlined_call_operand.vmem [shape: f32[3,8], index: 1, kind: input, shape index: {}]   ;;  %s120_s2 = inlined_call_operand.<no memory space> [shape: f32[], index: 2, kind: input, shape index: {}]   ;;  %s121_s3 = inlined_call_operand.vmem [shape: f32[1,128], index: 3, kind: output, shape index: {}]  }
   0x1   :  { %v8_v0 = vstv %s120_s2 }
   0x2   :  { %9 = vsyncpa [#allocation8], 0  ;;  %s16_s16 = sshll.u32 %s118_s0, 4  ;;  %s17_s16 = int_to_ptr.vmem [resolvable:$true] %s16_s16 }
   0x3   :  { %s71_s17 = scalar_lea.vmem %s17_s16, 16  ;;  %p76_p1 = scmp.lt.s32.totalorder %s17_s16, %s17_s16 }
   0x4   :  { %p72_p0 = scmp.ne.s32.totalorder %s17_s16, %s71_s17  ;;  %p77_p2 = scmp.lt.s32.totalorder %s71_s17, %s71_s17 }
   0x6   :  { %p78_p3 = por %p77_p2, %p76_p1 }
   0x8   :  { %p79_p4 = pnand %p78_p3, %p72_p0 }
   0xa   :  { %82 = shalt.err (!%p79_p4)
}
   0xb   :  { %s85_s18 = smov [#allocation7]  }
   0xc   :  { %19 = dma.vmem_to_smem %s17_s16, 16, %s85_s18, [#allocation8]  }
   0xd   :  { %83 = dma.done.wait [#allocation8], 16  }
   0xe   :  { %84 = vsyncadd [#allocation8], 4294967280 }
   0xf   :  { %25 = sfence }
  0x10   :  { %v27_v1 = vlaneseq  ;;  %v26_v2 = vld [vmem:[%s119_s1] sm:$0x7]  ;;  %s40_s0 = sld [smem:[#allocation7]] }
  0x11   :  { %s67_s20 = sld [smem:[#allocation7 + $0x1]] }
  0x12   :  { %v28_v3 = vshrl.u32 %v27_v1, 7  ;;  %v33_v4 = vand.u32 127, %v27_v1  ;;  %s68_s21 = sld [smem:[#allocation7 + $0x2]] }
  0x13   :  { %s69_s22 = sld [smem:[#allocation7 + $0x3]] }
  0x14   :  { %vm30_vm0 = vcmp.lt.s32.totalorder %v28_v3, 3  ;;  %vm35_vm1 = vcmp.lt.s32.totalorder %v33_v4, 8 }
  0x15   :  { %v31_v5 = vsel %vm30_vm0, %v26_v2, %v8_v0 }
  0x16   :  { %v36_v6 = vsel %vm35_vm1, %v31_v5, %v8_v0  ;;  %v45_v7 = vstv %s40_s0 }
  0x17   :  { %39 = vst [vmem:[#allocation9] sm:$0xf] %v36_v6  ;;  %v47_v8 = vstv %s67_s20 }
  0x18   :  { %v53_v9 = vstv %s68_s21 }
  0x19   :  { %v59_v17 = vstv %s69_s22 }
  0x1e   :  { %v44_v10 = vld [vmem:[#allocation9] sm:$0x7] }
  0x1f   :  { %v46_v11 = vmul.f32 %v45_v7, %v44_v10  ;;  %v48_v12 = vmul.f32 %v47_v8, %v44_v10  ;;  %v54_v13 = vmul.f32 %v53_v9, %v44_v10 }
  0x21   :  { %v50_v14 = vrot.slane %v48_v12, 1  ;;  %v56_v15 = vrot.slane %v54_v13, 2 }
  0x23   :  { %v52_v16 = vadd.f32 %v50_v14, %v46_v11 }
  0x25   :  { %v58_v18 = vadd.f32 %v56_v15, %v52_v16 }
  0x27   :  { %v60_v19 = vadd.f32 %v59_v17, %v58_v18 }
  0x29   :  { %61 = vst [vmem:[%s121_s3] sm:$0x1] %v60_v19 }
  0x2a   :  { %66 = vsyncpa [#allocation8], 1 }

</bundles_post_ra>
